<compile_context>
chip_gen: v5e
topology: v5e:2x2
jax: 0.10.0
libtpu: 0.0.40
codegen_flags: <defaults>
</compile_context>

<pallas_src>
import functools

import jax
import jax.numpy as jnp
from jax.experimental import pallas as pl
from jax.experimental.pallas import tpu as pltpu


# ----------------------------------------------------------------------------
# Fused kernel: connector Linear -> SAP attention -> masked softmax over T ->
# weighted pooling -> classifier Linear.  One batch block (Bb utterances) / step.
# ----------------------------------------------------------------------------
def _forward_kernel(feat_ref, mask_ref, wc_ref, bc_ref, ws_ref, bs_ref,
                    wo_ref, bo_ref, out_ref, *, bb, seq_len):
    di = wc_ref.shape[1]

    # Connector: one (Bb*T, Du) bf16 @ (Du, Di) bf16 matmul, f32 accumulation.
    h = jnp.dot(feat_ref[...], wc_ref[...], preferred_element_type=jnp.float32)
    h = h + bc_ref[...]                                   # (Bb*T, Di) f32
    h3 = h.reshape(bb, seq_len, di)                       # (Bb, T, Di)

    # SAP attention logits: VPU multiply + lane reduce (no N=1 MXU matmul).
    att = jnp.sum(h3 * ws_ref[...][None], axis=-1)        # (Bb, T)  lane-dense over T
    att = att + bs_ref[...] + mask_ref[...]               # additive padding mask

    # Masked softmax over time (lane axis).
    m = jnp.max(att, axis=-1, keepdims=True)              # (Bb, 1)
    e = jnp.exp(att - m)                                  # (Bb, T)
    w = e * pl.reciprocal(jnp.sum(e, axis=-1, keepdims=True), approx=True)

    # Weighted pooling over time (sublane reduce).
    utter = jnp.sum(h3 * w[..., None], axis=1)            # (Bb, Di)

    # Classifier: one (Bb, Di) @ (Di, Cp) matmul, lane-dense (Cp % 128 == 0) output.
    out_ref[...] = (jnp.dot(utter, wo_ref[...], preferred_element_type=jnp.float32)
                    + bo_ref[...])


def emotion_forward(feats, mask_add, w_conn, b_conn, w_sap, b_sap, w_cls, b_cls,
                    *, block_b=None, vmem_budget_bytes=32 * 1024 * 1024):
    """feats: (B, T, D_up) f32; mask_add: (B, T) additive mask (0 valid, -1e5 pad)."""
    B, T, Du = feats.shape
    Di = w_conn.shape[1]
    C = w_cls.shape[1]

    # Lane-dense classifier output: pad class dim up to a multiple of 128.
    Cp = ((C + 127) // 128) * 128

    # Utterances per grid step: keep double-buffered bf16 feature blocks (plus the f32
    # h intermediate) inside a conservative VMEM budget (v7x has only 64 MiB physical).
    if block_b is None:
        bytes_per_utt = T * Du * 2 + T * Di * 4
        cap = max(1, vmem_budget_bytes // (2 * bytes_per_utt))
        block_b = B if B <= cap else max(8, (cap // 8) * 8)
    Bb = block_b

    # Pad batch to a multiple of Bb; padded rows are sliced off before the loss.
    Bp = ((B + Bb - 1) // Bb) * Bb
    if Bp != B:
        feats = jnp.pad(feats, ((0, Bp - B), (0, 0), (0, 0)))
        mask_add = jnp.pad(mask_add, ((0, Bp - B), (0, 0)))

    # bf16 inputs for the connector GEMM (halved HBM traffic, f32 accumulation kept).
    feats_flat = feats.astype(jnp.bfloat16).reshape(Bp * T, Du)
    wc = w_conn.astype(jnp.bfloat16)

    wo = jnp.pad(w_cls, ((0, 0), (0, Cp - C)))
    bo = jnp.pad(b_cls, ((0, 0), (0, Cp - C)))
    ws = w_sap.reshape(1, Di)

    kernel = functools.partial(_forward_kernel, bb=Bb, seq_len=T)

    grid_spec = pltpu.PrefetchScalarGridSpec(
        num_scalar_prefetch=0,
        grid=(Bp // Bb,),
        in_specs=[
            pl.BlockSpec((Bb * T, Du), lambda b: (b, 0)),   # flattened bf16 features
            pl.BlockSpec((Bb, T), lambda b: (b, 0)),        # additive mask
            pl.BlockSpec((Du, Di), lambda b: (0, 0)),       # connector weight (bf16)
            pl.BlockSpec((1, Di), lambda b: (0, 0)),        # connector bias
            pl.BlockSpec((1, Di), lambda b: (0, 0)),        # SAP weight (row vector)
            pl.BlockSpec((1, 1), lambda b: (0, 0)),         # SAP bias
            pl.BlockSpec((Di, Cp), lambda b: (0, 0)),       # classifier weight (padded)
            pl.BlockSpec((1, Cp), lambda b: (0, 0)),        # classifier bias (padded)
        ],
        out_specs=pl.BlockSpec((Bb, Cp), lambda b: (b, 0)),
    )

    logits_p = pl.pallas_call(
        kernel,
        out_shape=jax.ShapeDtypeStruct((Bp, Cp), jnp.float32),
        grid_spec=grid_spec,
        compiler_params=pltpu.CompilerParams(
            dimension_semantics=("parallel",),
            vmem_limit_bytes=64 * 1024 * 1024),
    )(feats_flat, mask_add, wc, b_conn, ws, b_sap, wo, bo)

    return logits_p[:B, :C]


# ----------------------------------------------------------------------------
# Full DownstreamExpert.forward equivalent.  CE / argmax are a trivial XLA
# epilogue (a standalone (B, C) kernel would be pure launch + HBM round-trip).
# ----------------------------------------------------------------------------
@jax.jit
def downstream_expert_forward(feats_pad, valid_mask, labels, params):
    # attention_mask_pad = (1.0 - mask) * -100000.0
    mask_add = (1.0 - valid_mask) * -100000.0                     # (B, T)
    logits = emotion_forward(feats_pad, mask_add, *params)        # (B, C)

    # CrossEntropyLoss (mean over batch) + argmax accuracy.
    lse = jax.scipy.special.logsumexp(logits, axis=-1)
    tgt = jnp.take_along_axis(logits, labels[:, None], axis=-1)[:, 0]
    loss = jnp.mean(lse - tgt)
    predicted_classid = jnp.argmax(logits, axis=-1)
    acc = (predicted_classid == labels).astype(jnp.float32)
    return loss, logits, predicted_classid, acc


def _reference(feats_pad, valid_mask, labels, params):
    """Pure-JAX reference of the same math (connector in bf16, like the kernel)."""
    w_conn, b_conn, w_sap, b_sap, w_cls, b_cls = params
    mask_add = (1.0 - valid_mask) * -100000.0
    h = jnp.dot(feats_pad.astype(jnp.bfloat16), w_conn.astype(jnp.bfloat16),
                preferred_element_type=jnp.float32) + b_conn[0]
    att = (h @ w_sap)[..., 0] + b_sap[0, 0] + mask_add
    att_w = jax.nn.softmax(att, axis=-1)[..., None]
    utter = jnp.sum(h * att_w, axis=1)
    logits = utter @ w_cls + b_cls[0]
    lse = jax.scipy.special.logsumexp(logits, axis=-1)
    loss = jnp.mean(lse - jnp.take_along_axis(logits, labels[:, None], axis=-1)[:, 0])
    return loss, logits


if __name__ == "__main__":
    # Small, module-consistent shapes.
    B, T = 2, 8
    UPSTREAM_DIM = 32      # upstream_dim
    INPUT_DIM = 32         # modelrc['input_dim']
    NUM_CLASSES = 4        # IEMOCAP class_num

    key = jax.random.PRNGKey(0)
    k_feat, k_wc, k_bc, k_ws, k_bs, k_wo, k_bo, k_lab = jax.random.split(key, 8)

    # Variable-length features (pad_sequence behavior), lengths = [8, 5].
    lengths = jnp.array([8, 5], dtype=jnp.int32)
    feats_pad = jax.random.normal(k_feat, (B, T, UPSTREAM_DIM), dtype=jnp.float32)
    valid_mask = (jnp.arange(T)[None, :] < lengths[:, None]).astype(jnp.float32)
    feats_pad = feats_pad * valid_mask[..., None]   # zero the padded frames

    # Deterministic synthetic parameters (shapes from __init__ / emotion Model).
    params = (
        jax.random.normal(k_wc, (UPSTREAM_DIM, INPUT_DIM), jnp.float32) * 0.1,  # connector W
        jax.random.normal(k_bc, (1, INPUT_DIM), jnp.float32) * 0.1,             # connector b
        jax.random.normal(k_ws, (INPUT_DIM, 1), jnp.float32) * 0.1,             # SAP W
        jax.random.normal(k_bs, (1, 1), jnp.float32) * 0.1,                     # SAP b
        jax.random.normal(k_wo, (INPUT_DIM, NUM_CLASSES), jnp.float32) * 0.1,   # classifier W
        jax.random.normal(k_bo, (1, NUM_CLASSES), jnp.float32) * 0.1,           # classifier b
    )

    labels = jax.random.randint(k_lab, (B,), 0, NUM_CLASSES, dtype=jnp.int32)

    loss, logits, pred, acc = downstream_expert_forward(feats_pad, valid_mask, labels, params)
    jax.block_until_ready((loss, logits, pred, acc))

    # Correctness check against a pure-JAX reference of the same math.
    # Tolerance is loosened slightly for the approx-reciprocal softmax denominator.
    ref_loss, ref_logits = _reference(feats_pad, valid_mask, labels, params)
    assert jnp.allclose(logits, ref_logits, atol=5e-3, rtol=5e-3), "logits mismatch"
    assert jnp.allclose(loss, ref_loss, atol=5e-3, rtol=5e-3), "loss mismatch"

    print("KERNEL_OK")
</pallas_src>

<mosaic_0001>
module attributes {stable_mosaic.version = 11 : i64} {
  func.func @_forward_kernel(%arg0: i32, %arg1: memref<16x32xbf16, #tpu.memory_space<vmem>>, %arg2: memref<2x8xf32, #tpu.memory_space<vmem>>, %arg3: memref<32x32xbf16, #tpu.memory_space<vmem>>, %arg4: memref<1x32xf32, #tpu.memory_space<vmem>>, %arg5: memref<1x32xf32, #tpu.memory_space<vmem>>, %arg6: memref<1x1xf32, #tpu.memory_space<vmem>>, %arg7: memref<32x128xf32, #tpu.memory_space<vmem>>, %arg8: memref<1x128xf32, #tpu.memory_space<vmem>>, %arg9: memref<2x128xf32, #tpu.memory_space<vmem>>) attributes {dimension_semantics = [#tpu.dimension_semantics<parallel>], iteration_bounds = array<i64: 1>, scalar_prefetch = 0 : i64, scratch_operands = 0 : i64, tpu.core_type = #tpu.core_type<tc>, window_params = [{transform_indices = @transform_0, window_bounds = array<i64: 16, 32>}, {transform_indices = @transform_1, window_bounds = array<i64: 2, 8>}, {pipeline_mode = #tpu.pipeline_mode<synchronous>, transform_indices = @transform_2, window_bounds = array<i64: 32, 32>}, {pipeline_mode = #tpu.pipeline_mode<synchronous>, transform_indices = @transform_3, window_bounds = array<i64: 1, 32>}, {pipeline_mode = #tpu.pipeline_mode<synchronous>, transform_indices = @transform_4, window_bounds = array<i64: 1, 32>}, {pipeline_mode = #tpu.pipeline_mode<synchronous>, transform_indices = @transform_5, window_bounds = array<i64: 1, 1>}, {pipeline_mode = #tpu.pipeline_mode<synchronous>, transform_indices = @transform_6, window_bounds = array<i64: 32, 128>}, {pipeline_mode = #tpu.pipeline_mode<synchronous>, transform_indices = @transform_7, window_bounds = array<i64: 1, 128>}, {transform_indices = @transform_8, window_bounds = array<i64: 2, 128>}]} {
    %c0 = arith.constant 0 : index
    %c0_0 = arith.constant 0 : index
    %0 = vector.load %arg1[%c0, %c0_0] : memref<16x32xbf16, #tpu.memory_space<vmem>>, vector<16x32xbf16>
    %c0_1 = arith.constant 0 : index
    %c0_2 = arith.constant 0 : index
    %1 = vector.load %arg3[%c0_1, %c0_2] : memref<32x32xbf16, #tpu.memory_space<vmem>>, vector<32x32xbf16>
    %cst = arith.constant dense<0.000000e+00> : vector<16x32xf32>
    %2 = tpu.matmul %0, %1, %cst {dimension_numbers = #tpu.dot_dimension_numbers<[1], [0], [0], [1], [0, 0, 1, 1], [], []>} : vector<16x32xbf16>, vector<32x32xbf16>, vector<16x32xf32> -> vector<16x32xf32>
    %c0_3 = arith.constant 0 : index
    %c0_4 = arith.constant 0 : index
    %3 = vector.load %arg4[%c0_3, %c0_4] : memref<1x32xf32, #tpu.memory_space<vmem>>, vector<1x32xf32>
    %4 = vector.broadcast %3 : vector<1x32xf32> to vector<16x32xf32>
    %5 = arith.addf %2, %4 : vector<16x32xf32>
    %6 = vector.shape_cast %5 : vector<16x32xf32> to vector<2x8x32xf32>
    %c0_5 = arith.constant 0 : index
    %c0_6 = arith.constant 0 : index
    %7 = vector.load %arg5[%c0_5, %c0_6] : memref<1x32xf32, #tpu.memory_space<vmem>>, vector<1x32xf32>
    %8 = vector.shape_cast %7 : vector<1x32xf32> to vector<1x1x32xf32>
    %9 = vector.broadcast %8 : vector<1x1x32xf32> to vector<2x8x32xf32>
    %10 = arith.mulf %6, %9 : vector<2x8x32xf32>
    %cst_7 = arith.constant dense<0.000000e+00> : vector<2x8xf32>
    %11 = vector.multi_reduction <add>, %10, %cst_7 [2] : vector<2x8x32xf32> to vector<2x8xf32>
    %c0_8 = arith.constant 0 : index
    %c0_9 = arith.constant 0 : index
    %12 = vector.load %arg6[%c0_8, %c0_9] : memref<1x1xf32, #tpu.memory_space<vmem>>, vector<1x1xf32>
    %13 = vector.broadcast %12 : vector<1x1xf32> to vector<2x8xf32>
    %14 = arith.addf %11, %13 : vector<2x8xf32>
    %c0_10 = arith.constant 0 : index
    %c0_11 = arith.constant 0 : index
    %15 = vector.load %arg2[%c0_10, %c0_11] : memref<2x8xf32, #tpu.memory_space<vmem>>, vector<2x8xf32>
    %16 = arith.addf %14, %15 : vector<2x8xf32>
    %cst_12 = arith.constant dense<0xFF800000> : vector<2xf32>
    %17 = vector.multi_reduction <maximumf>, %16, %cst_12 [1] : vector<2x8xf32> to vector<2xf32>
    %18 = vector.shape_cast %17 : vector<2xf32> to vector<2x1xf32>
    %19 = vector.broadcast %18 : vector<2x1xf32> to vector<2x8xf32>
    %20 = arith.subf %16, %19 : vector<2x8xf32>
    %21 = math.exp %20 : vector<2x8xf32>
    %cst_13 = arith.constant dense<0.000000e+00> : vector<2xf32>
    %22 = vector.multi_reduction <add>, %21, %cst_13 [1] : vector<2x8xf32> to vector<2xf32>
    %23 = vector.shape_cast %22 : vector<2xf32> to vector<2x1xf32>
    %24 = tpu.reciprocal %23 {approx = true} : vector<2x1xf32> -> vector<2x1xf32>
    %25 = vector.broadcast %24 : vector<2x1xf32> to vector<2x8xf32>
    %26 = arith.mulf %21, %25 : vector<2x8xf32>
    %27 = vector.shape_cast %26 : vector<2x8xf32> to vector<2x8x1xf32>
    %28 = vector.broadcast %27 : vector<2x8x1xf32> to vector<2x8x32xf32>
    %29 = arith.mulf %6, %28 : vector<2x8x32xf32>
    %cst_14 = arith.constant dense<0.000000e+00> : vector<2x32xf32>
    %30 = vector.multi_reduction <add>, %29, %cst_14 [1] : vector<2x8x32xf32> to vector<2x32xf32>
    %c0_15 = arith.constant 0 : index
    %c0_16 = arith.constant 0 : index
    %31 = vector.load %arg7[%c0_15, %c0_16] : memref<32x128xf32, #tpu.memory_space<vmem>>, vector<32x128xf32>
    %cst_17 = arith.constant dense<0.000000e+00> : vector<2x128xf32>
    %32 = tpu.matmul %30, %31, %cst_17 {dimension_numbers = #tpu.dot_dimension_numbers<[1], [0], [0], [1], [0, 0, 1, 1], [], []>} : vector<2x32xf32>, vector<32x128xf32>, vector<2x128xf32> -> vector<2x128xf32>
    %c0_18 = arith.constant 0 : index
    %c0_19 = arith.constant 0 : index
    %33 = vector.load %arg8[%c0_18, %c0_19] : memref<1x128xf32, #tpu.memory_space<vmem>>, vector<1x128xf32>
    %34 = vector.broadcast %33 : vector<1x128xf32> to vector<2x128xf32>
    %35 = arith.addf %32, %34 : vector<2x128xf32>
    %c0_20 = arith.constant 0 : index
    %c0_21 = arith.constant 0 : index
    %36 = vector.load %arg9[%c0_20, %c0_21] : memref<2x128xf32, #tpu.memory_space<vmem>>, vector<2x128xf32>
    tpu.vector_store %arg9[%c0_20, %c0_21], %35 {strides = array<i32>} : memref<2x128xf32, #tpu.memory_space<vmem>>, vector<2x128xf32>,
    return
  }
  func.func @transform_0(%arg0: i32) -> (i32, i32) {
    %c0_i32 = arith.constant 0 : i32
    %c0_i32_0 = arith.constant 0 : i32
    return %arg0, %c0_i32 : i32, i32
  }
  func.func @transform_1(%arg0: i32) -> (i32, i32) {
    %c0_i32 = arith.constant 0 : i32
    %c0_i32_0 = arith.constant 0 : i32
    return %arg0, %c0_i32 : i32, i32
  }
  func.func @transform_2(%arg0: i32) -> (i32, i32) {
    %c0_i32 = arith.constant 0 : i32
    %c0_i32_0 = arith.constant 0 : i32
    %c0_i32_1 = arith.constant 0 : i32
    return %c0_i32, %c0_i32_0 : i32, i32
  }
  func.func @transform_3(%arg0: i32) -> (i32, i32) {
    %c0_i32 = arith.constant 0 : i32
    %c0_i32_0 = arith.constant 0 : i32
    %c0_i32_1 = arith.constant 0 : i32
    return %c0_i32, %c0_i32_0 : i32, i32
  }
  func.func @transform_4(%arg0: i32) -> (i32, i32) {
    %c0_i32 = arith.constant 0 : i32
    %c0_i32_0 = arith.constant 0 : i32
    %c0_i32_1 = arith.constant 0 : i32
    return %c0_i32, %c0_i32_0 : i32, i32
  }
  func.func @transform_5(%arg0: i32) -> (i32, i32) {
    %c0_i32 = arith.constant 0 : i32
    %c0_i32_0 = arith.constant 0 : i32
    %c0_i32_1 = arith.constant 0 : i32
    return %c0_i32, %c0_i32_0 : i32, i32
  }
  func.func @transform_6(%arg0: i32) -> (i32, i32) {
    %c0_i32 = arith.constant 0 : i32
    %c0_i32_0 = arith.constant 0 : i32
    %c0_i32_1 = arith.constant 0 : i32
    return %c0_i32, %c0_i32_0 : i32, i32
  }
  func.func @transform_7(%arg0: i32) -> (i32, i32) {
    %c0_i32 = arith.constant 0 : i32
    %c0_i32_0 = arith.constant 0 : i32
    %c0_i32_1 = arith.constant 0 : i32
    return %c0_i32, %c0_i32_0 : i32, i32
  }
  func.func @transform_8(%arg0: i32) -> (i32, i32) {
    %c0_i32 = arith.constant 0 : i32
    %c0_i32_0 = arith.constant 0 : i32
    return %arg0, %c0_i32 : i32, i32
  }
}

</mosaic_0001>

<bundles_post_ra>
// kernel: downstream_expert_forward.1
= control target key start
LH: loop header
LB: loop body
LE: loop exit
PB: predicated region body
PF: predicated region fallthrough
CT: control target
= control target key end

     0   :  { %v269_v1 = vmov 0   ;;  %vm59_vm0 = vcmask 261120   ;;  %v101_v6 = vlaneseq  ;;  %vm130_vm1 = vcmask 1041409   ;;  %s373_s2 = inlined_call_operand.vmem [shape: bf16[32,32], index: 2, kind: input, shape index: {}]   ;;  %s374_s5 = inlined_call_operand.<no memory space> [shape: f32[1,1], index: 5, kind: input, shape index: {}]   ;;  %s375_s3 = inlined_call_operand.vmem [shape: f32[1,32], index: 3, kind: input, shape index: {}]   ;;  %s376_s0 = inlined_call_operand.vmem [shape: bf16[16,32], index: 0, kind: input, shape index: {}]   ;;  %s377_s4 = inlined_call_operand.vmem [shape: f32[1,32], index: 4, kind: input, shape index: {}]   ;;  %s378_s1 = inlined_call_operand.vmem [shape: f32[2,8], index: 1, kind: input, shape index: {}]   ;;  %s379_s7 = inlined_call_operand.vmem [shape: f32[1,128], index: 7, kind: input, shape index: {}]   ;;  %s380_s6 = inlined_call_operand.vmem [shape: f32[32,128], index: 6, kind: input, shape index: {}]   ;;  %s381_s8 = inlined_call_operand.vmem [shape: f32[2,128], index: 8, kind: output, shape index: {}]  }
   0x1   :  { %v251_v0 = vld [vmem:[%s373_s2 + $0x8] sm:$0xff]  ;;  %253 = vset.pattern.permute.xlu1 %v269_v1  ;;  %v13_v2 = vstv %s374_s5  ;;  %257 = vset.pattern.permute.xlu0 %v269_v1  ;;  %v250_v3 = vld [vmem:[%s373_s2] sm:$0xff]  ;;  %vm133_vm2 = vcmask 58368   ;;  %v200_v58 = vld [vmem:[%s380_s6 + $0x18] sm:$0xff] }
   0x2   :  { %14 = vst [vmem:[#allocation2] sm:$0x1] %v13_v2  ;;  %69 = vmatpush.bf16.msra.mxu0 %v251_v0  ;;  %v249_v4 = vld [vmem:[%s376_s0] sm:$0xff]  ;;  %v102_v7 = vshrl.u32 %v101_v6, 7  ;;  %v127_v30 = vand.u32 127, %v101_v6  ;;  %222 = vmatpush.msra.mxu1 %v200_v58  ;;  %v199_v59 = vld [vmem:[%s380_s6 + $0x10] sm:$0xff] }
   0x3   :  { %v98_v8 = vld [vmem:[%s378_s1] sm:$0x3]  ;;  %v198_v60 = vld [vmem:[%s380_s6 + $0x8] sm:$0xff] }
   0x4   :  { %255 = vset.pattern.permute.xlu2 %v102_v7  ;;  %v100_v9 = vperm.slane %v98_v8, 0  ;;  %v107_v10 = vperm.slane %v98_v8, 1  ;;  %v260_v11 = vld [vmem:[%s375_s3] ss:$0 sm:$0xff]  ;;  %223 = vmatpush.msra.mxu1 %v199_v59 }
   0x5   :  { %v261_v12 = vld [vmem:[%s377_s4] ss:$0 sm:$0xff] }
   0x6   :  { %70 = vmatpush.bf16.msra.mxu0 %v250_v3  ;;  %v197_v61 = vld [vmem:[%s380_s6] sm:$0xff]  ;;  %224 = vmatpush.msra.mxu1 %v198_v60 }
   0x8   :  { %225 = vmatpush.msra.mxu1 %v197_v61 }
   0x9   :  { %v259_v5 = vld [vmem:[#allocation2] ss:$0 sm:$0xff]  ;;  %247 = vmatmul.msk.bf16.vlgmr.msra.gmra.mxu0 %vm59_vm0, %v249_v4 }
   0xa   :  { %93 = vperm.xlu1 %253, %v259_v5  }
   0xc   :  { %112 = vperm.xlu2 %255, %v107_v10  }
  0x12   :  { %254 = vset.pattern.permute.xlu1 %v102_v7 }
  0x14   :  { %256 = vset.pattern.permute.xlu2 %v269_v1 }
  0x1a   :  { %105 = vperm.xlu1 %254, %v100_v9  }
  0x22   :  { %258 = vset.pattern.permute.xlu1 %v269_v1 }
  0x66   :  { %v113_v27 = vpop.permute.xlu2 %112 }
  0x7c   :  { %v94_v21 = vpop.permute.xlu1 %93 }
  0x86   :  { %v72_v13 = vpop.f32.mrf.mxu0 }
  0x87   :  { %v337_v14 = vadd.f32 %v260_v11, %v72_v13 }
  0x89   :  { %v81_v15 = vmul.f32 %v261_v12, %v337_v14 }
  0x8b   :  { %v83_v16 = vsel %vm59_vm0, %v81_v15, 0.0 }
  0x8c   :  { %84 = vadd.xlane.f32.xlu0 %v83_v16  ;;  %v106_v23 = vpop.permute.xlu1 %105 }
  0x8e   :  { %v74_v17 = vpop.f32.mrf.mxu0 }
  0x8f   :  { %v341_v18 = vadd.f32 %v260_v11, %v74_v17 }
  0x91   :  { %v82_v19 = vmul.f32 %v261_v12, %v341_v18 }
  0x93   :  { %v86_v20 = vsel %vm59_vm0, %v82_v19, 0.0 }
  0x94   :  { %87 = vadd.xlane.f32.xlu0 %v86_v20 }
  0xff   :  { %v85_v22 = vpop.xlane.xlu0 %84 }
 0x100   :  { %v96_v24 = vadd.f32 %v94_v21, %v85_v22 }
 0x102   :  { %v116_v25 = vadd.f32 %v106_v23, %v96_v24 }
 0x104   :  { %121 = vperm.xlu2 %256, %v116_v25  }
 0x107   :  { %v88_v26 = vpop.xlane.xlu0 %87 }
 0x108   :  { %v97_v28 = vadd.f32 %v94_v21, %v88_v26 }
 0x10a   :  { %v117_v29 = vadd.f32 %v113_v27, %v97_v28 }
 0x10c   :  { %124 = vperm.xlu0 %257, %v117_v29  }
 0x15e   :  { %v122_v31 = vpop.permute.xlu2 %121 }
 0x15f   :  { %v128_v33 = vperm.slane %v122_v31, %v127_v30 }
 0x17e   :  { %v125_v32 = vpop.permute.xlu0 %124 }
 0x17f   :  { %v129_v34 = vperm.slane %v125_v32, %v127_v30 }
 0x181   :  { %v131_v35 = vsel %vm130_vm1, %v129_v34, %v128_v33 }
 0x182   :  { %v134_v36 = vsel %vm133_vm2, %v131_v35, -inf }
 0x183   :  { %135 = vmax.xlane.f32.xlu1 %v134_v36 }
 0x1f6   :  { %v136_v37 = vpop.xlane.xlu1 %135 }
 0x1f7   :  { %v138_v38 = vperm.slane %v136_v37, 0  ;;  %v139_v39 = vperm.slane %v136_v37, 1 }
 0x1f9   :  { %v142_v40 = vsub.f32 %v116_v25, %v138_v38  ;;  %v143_v42 = vsub.f32 %v117_v29, %v139_v39 }
 0x1fb   :  { %v144_v41 = vmul.f32 1.442695, %v142_v40  ;;  %v146_v43 = vmul.f32 1.442695, %v143_v42 }
 0x1fd   :  { %263 = vpow2.f32 %v144_v41 }
 0x1fe   :  { %265 = vpow2.f32 %v146_v43 }
 0x203   :  { %v264_v44 = vpop.eup %263 }
 0x204   :  { %151 = vperm.xlu2 %256, %v264_v44   ;;  %v266_v45 = vpop.eup %265 }
 0x20c   :  { %154 = vperm.xlu2 %256, %v266_v45  }
 0x25e   :  { %v152_v46 = vpop.permute.xlu2 %151 }
 0x25f   :  { %v156_v48 = vperm.slane %v152_v46, %v127_v30 }
 0x266   :  { %v155_v47 = vpop.permute.xlu2 %154 }
 0x267   :  { %v157_v49 = vperm.slane %v155_v47, %v127_v30 }
 0x269   :  { %v158_v50 = vsel %vm130_vm1, %v157_v49, %v156_v48 }
 0x26a   :  { %v160_v51 = vsel %vm133_vm2, %v158_v50, 0.0 }
 0x26b   :  { %161 = vadd.xlane.f32.xlu2 %v160_v51 }
 0x2de   :  { %v162_v52 = vpop.xlane.xlu2 %161 }
 0x2df   :  { %267 = vrcp.f32 %v162_v52 }
 0x2e5   :  { %v268_v53 = vpop.eup %267 }
 0x2e6   :  { %v166_v54 = vperm.slane %v268_v53, 1  ;;  %v165_v55 = vperm.slane %v268_v53, 0 }
 0x2e8   :  { %v170_v56 = vmul.f32 %v266_v45, %v166_v54  ;;  %v169_v57 = vmul.f32 %v264_v44, %v165_v55 }
 0x2ea   :  { %178 = vperm.xlu1 %258, %v170_v56   ;;  %173 = vperm.xlu0 %257, %v169_v57  }
 0x35c   :  { %v179_v62 = vpop.permute.xlu1 %178  ;;  %v174_v63 = vpop.permute.xlu0 %173 }
 0x35d   :  { %v182_v0 = vmul.f32 %v179_v62, %v341_v18  ;;  %v181_v1 = vmul.f32 %v174_v63, %v337_v14  ;;  %v262_v14 = vld [vmem:[%s379_s7] ss:$0 sm:$0xff] }
 0x35f   :  { %v190_v2 = vsel %vm59_vm0, %v182_v0, 0.0  ;;  %v183_v3 = vsel %vm59_vm0, %v181_v1, 0.0 }
 0x360   :  { %v191_v4 = vrot.slane %v190_v2, 4  ;;  %v184_v5 = vrot.slane %v183_v3, 4 }
 0x362   :  { %v192_v6 = vadd.f32 %v191_v4, %v190_v2  ;;  %v185_v7 = vadd.f32 %v184_v5, %v183_v3 }
 0x364   :  { %v193_v8 = vrot.slane %v192_v6, 2  ;;  %v186_v9 = vrot.slane %v185_v7, 2 }
 0x366   :  { %v194_v10 = vadd.f32 %v193_v8, %v192_v6  ;;  %v187_v11 = vadd.f32 %v186_v9, %v185_v7 }
 0x368   :  { %v195_v12 = vrot.slane %v194_v10, 1  ;;  %v188_v13 = vrot.slane %v187_v11, 1 }
 0x36a   :  { %v189_v15 = vadd.f32 %v188_v13, %v187_v11  ;;  %v196_v16 = vadd.f32 %v195_v12, %v194_v10 }
 0x36c   :  { %v207_v17 = vsel %vm130_vm1, %v196_v16, %v189_v15 }
 0x36d   :  { %248 = vmatmul.msk.f32.vlgmr.msra.gmra.mxu1 %vm59_vm0, %v207_v17 }
 0x3ea   :  { %v227_v18 = vpop.f32.mrf.mxu1 }
 0x3eb   :  { %v228_v19 = vadd.f32 %v262_v14, %v227_v18 }
 0x3ed   :  { %230 = vst [vmem:[%s381_s8] sm:$0x3] %v228_v19 }

</bundles_post_ra>
